<compile_context>
chip_gen: v7x
topology: tpu7x:2x2x1
jax: 0.10.0
libtpu: 0.0.40
codegen_flags: <defaults>
</compile_context>

<pallas_src>
import functools

import jax
import jax.numpy as jnp
from jax.experimental import pallas as pl
from jax.experimental.pallas import tpu as pltpu

NUM_BOND_TYPE = 7
NUM_BOND_DIRECTION = 3
NUM_ATOM_TYPE = 121
NUM_CHIRALITY_TAG = 11

LANE = 128     # lane-dense last dim
SUBLANE = 16   # bf16 sublane packing for the node axis


def _round_up(x, m):
    return (x + m - 1) // m * m


# ----------------------------------------------------------------------------
# Fused multi-layer GIN kernel.  grid = (num_layer,), layer axis "arbitrary".
# Per layer l:
#   aggr = A @ h + esum[l]                (self loops folded into A / esum)
#   h    = (ReLU(aggr @ W1 + b1)) @ W2 + b2
#   h    = BatchNorm(h)  (training-mode batch stats over the VALID nodes)
#   h    = ReLU(h)  for every layer except the last  (dropout p=0 == identity)
# h lives in a persistent VMEM scratch; A / h0 / bn-mask use constant
# index_maps so they are fetched once and stay resident.
# ----------------------------------------------------------------------------
def _fused_gin_kernel(A_ref, h0_ref, bnmask_ref, esum_ref,
                      w1_ref, b1_ref, w2_ref, b2_ref, gamma_ref, beta_ref,
                      hout_ref, h_vmem, *, eps):
    l = pl.program_id(0)
    num_l = pl.num_programs(0)

    # Layer 0: seed the resident node-feature buffer with the atom embeddings.
    @pl.when(l == 0)
    def _():
        h_vmem[...] = h0_ref[...]

    # --- GIN neighbor aggregation: bf16 inputs on the MXU, f32 accumulate ---
    aggr = jnp.dot(A_ref[...], h_vmem[...].astype(jnp.bfloat16),
                   preferred_element_type=jnp.float32)
    aggr = aggr + esum_ref[0]

    # --- GIN update MLP: Linear(D, 2D) -> ReLU -> Linear(2D, D) -------------
    z = jnp.dot(aggr.astype(jnp.bfloat16), w1_ref[0],
                preferred_element_type=jnp.float32) + b1_ref[0]
    z = jnp.maximum(z, 0.0)
    h = jnp.dot(z.astype(jnp.bfloat16), w2_ref[0],
                preferred_element_type=jnp.float32) + b2_ref[0]

    # --- BatchNorm1d (training-mode batch statistics over valid nodes) ------
    # bnmask = valid_row_mask / n_valid, so masked sums are already means;
    # padded rows/features never contaminate the statistics.
    bnmask = bnmask_ref[...]                                     # (Np, 1)
    mean = jnp.sum(h * bnmask, axis=0, keepdims=True)            # (1, Dp)
    centered = h - mean
    var = jnp.sum(centered * centered * bnmask, axis=0, keepdims=True)
    h = centered * jax.lax.rsqrt(var + eps) * gamma_ref[0] + beta_ref[0]

    # --- ReLU on every layer except the last ---------------------------------
    @pl.when(l != num_l - 1)
    def _():
        h_vmem[...] = jnp.maximum(h, 0.0)

    @pl.when(l == num_l - 1)
    def _():
        h_vmem[...] = h

    hout_ref[0] = h_vmem[...]


def fused_gnn(A, h0, bn_mask, esum, w1, b1, w2, b2, gamma, beta):
    L, Np, Dp = esum.shape
    Hp = w1.shape[-1]

    flops = L * (2 * Np * Np * Dp + 2 * Np * Dp * Hp + 2 * Np * Hp * Dp)
    bytes_accessed = (A.size * 2 + h0.size * 4 + bn_mask.size * 4
                      + esum.size * 4 + w1.size * 2 + w2.size * 2
                      + (b1.size + b2.size + gamma.size + beta.size) * 4
                      + L * Np * Dp * 4)

    # Rough VMEM need: resident A/h0/mask/h + double-buffered per-layer blocks.
    blk_bytes = (Np * Np * 2 + 2 * Np * Dp * 4 + Np * 4
                 + 2 * (Np * Dp * 4 + Dp * Hp * 2 + Hp * 4
                        + Hp * Dp * 2 + 3 * Dp * 4 + Np * Dp * 4))
    vmem_limit = int(min(64 * 1024 * 1024, max(32 * 1024 * 1024, 2 * blk_bytes)))

    kern = functools.partial(_fused_gin_kernel, eps=1e-5)
    const2 = lambda l: (0, 0)
    perlayer3 = lambda l: (l, 0, 0)

    return pl.pallas_call(
        kern,
        out_shape=jax.ShapeDtypeStruct((L, Np, Dp), jnp.float32),
        grid_spec=pltpu.PrefetchScalarGridSpec(
            num_scalar_prefetch=0,
            grid=(L,),
            in_specs=[
                pl.BlockSpec((Np, Np), const2),           # A        (resident)
                pl.BlockSpec((Np, Dp), const2),           # h0       (resident)
                pl.BlockSpec((Np, 1), const2),            # bn mask  (resident)
                pl.BlockSpec((1, Np, Dp), perlayer3),     # esum[l]
                pl.BlockSpec((1, Dp, Hp), perlayer3),     # w1[l]
                pl.BlockSpec((1, 1, Hp), perlayer3),      # b1[l]
                pl.BlockSpec((1, Hp, Dp), perlayer3),     # w2[l]
                pl.BlockSpec((1, 1, Dp), perlayer3),      # b2[l]
                pl.BlockSpec((1, 1, Dp), perlayer3),      # gamma[l]
                pl.BlockSpec((1, 1, Dp), perlayer3),      # beta[l]
            ],
            out_specs=pl.BlockSpec((1, Np, Dp), perlayer3),
            scratch_shapes=[pltpu.VMEM((Np, Dp), jnp.float32)],
        ),
        compiler_params=pltpu.CompilerParams(
            dimension_semantics=("arbitrary",),
            vmem_limit_bytes=vmem_limit,
        ),
        cost_estimate=pl.CostEstimate(
            flops=flops, transcendentals=L * Dp, bytes_accessed=bytes_accessed),
    )(A, h0, bn_mask, esum, w1, b1, w2, b2, gamma, beta)


# ----------------------------------------------------------------------------
# Deterministic parameter construction (synthetic; no checkpoint load)
# ----------------------------------------------------------------------------
def _xavier(key, shape):
    fan_in, fan_out = shape[0], shape[1]
    bound = (6.0 / (fan_in + fan_out)) ** 0.5
    return jax.random.uniform(key, shape, jnp.float32, -bound, bound)


def init_gnn_params(key, num_layer, hidden_size):
    keys = jax.random.split(key, 2 + num_layer * 6)
    params = {
        "x_emb1": _xavier(keys[0], (NUM_ATOM_TYPE, hidden_size)),
        "x_emb2": _xavier(keys[1], (NUM_CHIRALITY_TAG, hidden_size)),
        "layers": [],
    }
    idx = 2
    for _ in range(num_layer):
        k = keys[idx:idx + 6]
        idx += 6
        params["layers"].append({
            "edge_emb1": _xavier(k[0], (NUM_BOND_TYPE, hidden_size)),
            "edge_emb2": _xavier(k[1], (NUM_BOND_DIRECTION, hidden_size)),
            "w1": _xavier(k[2], (hidden_size, 2 * hidden_size)),
            "b1": jax.random.uniform(k[3], (2 * hidden_size,), jnp.float32, -0.1, 0.1),
            "w2": _xavier(k[4], (2 * hidden_size, hidden_size)),
            "b2": jax.random.uniform(k[5], (hidden_size,), jnp.float32, -0.1, 0.1),
            "gamma": jnp.ones((hidden_size,), jnp.float32),   # BatchNorm weight
            "beta": jnp.zeros((hidden_size,), jnp.float32),   # BatchNorm bias
        })
    return params


# ----------------------------------------------------------------------------
# GNN forward (GIN layers, JK selection)
# ----------------------------------------------------------------------------
def gnn_forward(params, x, edge_index, edge_attr, *, jk="last"):
    N = x.shape[0]
    D = params["x_emb1"].shape[1]
    L = len(params["layers"])

    Np = _round_up(N, SUBLANE)
    Dp = _round_up(D, LANE)
    Hp = _round_up(2 * D, LANE)

    # Initial atom embedding: x_embedding1(x[:,0]) + x_embedding2(x[:,1]).
    h0_real = (params["x_emb1"][x[:, 0]] + params["x_emb2"][x[:, 1]]).astype(jnp.float32)
    h0 = jnp.zeros((Np, Dp), jnp.float32).at[:N, :D].set(h0_real)

    # Append self-loop edges (bond type 4, direction 0), as in GINConv.forward.
    ar = jnp.arange(N, dtype=edge_index.dtype)
    src = jnp.concatenate([edge_index[0], ar])
    dst = jnp.concatenate([edge_index[1], ar])
    a0 = jnp.concatenate([edge_attr[:, 0], jnp.full((N,), 4, dtype=edge_attr.dtype)])
    a1 = jnp.concatenate([edge_attr[:, 1], jnp.zeros((N,), dtype=edge_attr.dtype)])

    # Dense adjacency A[dst, src] in bf16 (small integer counts are exact).
    # TODO(synk): for graphs with more than a few thousand nodes switch to a
    # row-tiled / sparse gather aggregation path; dense A is O(N^2).
    A = jnp.zeros((Np, Np), jnp.float32).at[dst, src].add(1.0).astype(jnp.bfloat16)

    # Per-layer edge-embedding sums scattered to destination nodes, stacked [L].
    def layer_esum(lp):
        emb = lp["edge_emb1"][a0] + lp["edge_emb2"][a1]            # (E+N, D)
        s = jnp.zeros((Np, D), jnp.float32).at[dst].add(emb)
        return jnp.pad(s, ((0, 0), (0, Dp - D)))
    esum = jnp.stack([layer_esum(lp) for lp in params["layers"]], axis=0)

    # Stacked, padded, bf16 weights + f32 bias / BN params.
    def pad2(w, r, c):
        return jnp.pad(w, ((0, r - w.shape[0]), (0, c - w.shape[1])))

    def pad1(v, c):
        return jnp.pad(v, (0, c - v.shape[0]))

    lps = params["layers"]
    w1 = jnp.stack([pad2(lp["w1"], Dp, Hp) for lp in lps]).astype(jnp.bfloat16)
    w2 = jnp.stack([pad2(lp["w2"], Hp, Dp) for lp in lps]).astype(jnp.bfloat16)
    b1 = jnp.stack([pad1(lp["b1"], Hp) for lp in lps]).reshape(L, 1, Hp)
    b2 = jnp.stack([pad1(lp["b2"], Dp) for lp in lps]).reshape(L, 1, Dp)
    gamma = jnp.stack([pad1(lp["gamma"], Dp) for lp in lps]).reshape(L, 1, Dp)
    beta = jnp.stack([pad1(lp["beta"], Dp) for lp in lps]).reshape(L, 1, Dp)

    # BatchNorm mask: 1/N on valid rows, 0 on padding (mean/var over N nodes).
    bn_mask = jnp.zeros((Np, 1), jnp.float32).at[:N].set(1.0 / N)

    hout = fused_gnn(A, h0, bn_mask, esum, w1, b1, w2, b2, gamma, beta)

    if jk == "last":
        return hout[-1, :N, :D]
    hs = [h0_real] + [hout[l, :N, :D] for l in range(L)]
    if jk == "concat":
        return jnp.concatenate(hs, axis=-1)
    elif jk == "max":
        return jnp.max(jnp.stack(hs, axis=0), axis=0)
    elif jk == "sum":
        return jnp.sum(jnp.stack(hs, axis=0), axis=0)
    else:
        raise ValueError(jk)


# ----------------------------------------------------------------------------
# Example run
# ----------------------------------------------------------------------------
if __name__ == "__main__":
    key = jax.random.PRNGKey(0)
    k_param, k_x, k_e = jax.random.split(key, 3)

    NUM_LAYER = 2        # module requires >= 2
    HIDDEN = 32
    N_NODES = 16

    params = init_gnn_params(k_param, NUM_LAYER, HIDDEN)

    # Node features: [:,0] atom type, [:,1] chirality tag.
    kx0, kx1 = jax.random.split(k_x)
    x = jnp.stack([
        jax.random.randint(kx0, (N_NODES,), 0, NUM_ATOM_TYPE),
        jax.random.randint(kx1, (N_NODES,), 0, NUM_CHIRALITY_TAG),
    ], axis=1).astype(jnp.int32)

    # Deterministic ring graph, both directions -> E = 2 * N_NODES edges.
    fwd = jnp.arange(N_NODES, dtype=jnp.int32)
    nxt = (fwd + 1) % N_NODES
    edge_index = jnp.stack([
        jnp.concatenate([fwd, nxt]),
        jnp.concatenate([nxt, fwd]),
    ], axis=0)                                            # (2, 32)

    ke0, ke1 = jax.random.split(k_e)
    edge_attr = jnp.stack([
        jax.random.randint(ke0, (edge_index.shape[1],), 0, NUM_BOND_TYPE),
        jax.random.randint(ke1, (edge_index.shape[1],), 0, NUM_BOND_DIRECTION),
    ], axis=1).astype(jnp.int32)                          # (32, 2)

    out = gnn_forward(params, x, edge_index, edge_attr, jk="last")
    jax.block_until_ready(out)
    assert out.shape == (N_NODES, HIDDEN)
    print("KERNEL_OK")
</pallas_src>

<mosaic_0001>
module attributes {stable_mosaic.version = 11 : i64} {
  func.func @_fused_gin_kernel(%arg0: i32, %arg1: memref<16x16xbf16, #tpu.memory_space<vmem>>, %arg2: memref<16x128xf32, #tpu.memory_space<vmem>>, %arg3: memref<16x1xf32, #tpu.memory_space<vmem>>, %arg4: memref<1x16x128xf32, #tpu.memory_space<vmem>>, %arg5: memref<1x128x128xbf16, #tpu.memory_space<vmem>>, %arg6: memref<1x1x128xf32, #tpu.memory_space<vmem>>, %arg7: memref<1x128x128xbf16, #tpu.memory_space<vmem>>, %arg8: memref<1x1x128xf32, #tpu.memory_space<vmem>>, %arg9: memref<1x1x128xf32, #tpu.memory_space<vmem>>, %arg10: memref<1x1x128xf32, #tpu.memory_space<vmem>>, %arg11: memref<1x16x128xf32, #tpu.memory_space<vmem>>, %arg12: memref<16x128xf32, #tpu.memory_space<vmem>>) attributes {dimension_semantics = [#tpu.dimension_semantics<arbitrary>], iteration_bounds = array<i64: 2>, scalar_prefetch = 0 : i64, scratch_operands = 1 : i64, tpu.core_type = #tpu.core_type<tc>, window_params = [{pipeline_mode = #tpu.pipeline_mode<synchronous>, transform_indices = @transform_0, window_bounds = array<i64: 16, 16>}, {pipeline_mode = #tpu.pipeline_mode<synchronous>, transform_indices = @transform_1, window_bounds = array<i64: 16, 128>}, {pipeline_mode = #tpu.pipeline_mode<synchronous>, transform_indices = @transform_2, window_bounds = array<i64: 16, 1>}, {transform_indices = @transform_3, window_bounds = array<i64: 1, 16, 128>}, {transform_indices = @transform_4, window_bounds = array<i64: 1, 128, 128>}, {transform_indices = @transform_5, window_bounds = array<i64: 1, 1, 128>}, {transform_indices = @transform_6, window_bounds = array<i64: 1, 128, 128>}, {transform_indices = @transform_7, window_bounds = array<i64: 1, 1, 128>}, {transform_indices = @transform_8, window_bounds = array<i64: 1, 1, 128>}, {transform_indices = @transform_9, window_bounds = array<i64: 1, 1, 128>}, {transform_indices = @transform_10, window_bounds = array<i64: 1, 16, 128>}]} {
    %c0_i32 = arith.constant 0 : i32
    %0 = arith.cmpi eq, %arg0, %c0_i32 : i32
    %1 = arith.extui %0 : i1 to i32
    %c0_i32_0 = arith.constant 0 : i32
    %2 = arith.cmpi ne, %1, %c0_i32_0 : i32
    scf.if %2 {
      %c0_41 = arith.constant 0 : index
      %c0_42 = arith.constant 0 : index
      %63 = vector.load %arg2[%c0_41, %c0_42] : memref<16x128xf32, #tpu.memory_space<vmem>>, vector<16x128xf32>
      %c0_43 = arith.constant 0 : index
      %c0_44 = arith.constant 0 : index
      %64 = vector.load %arg12[%c0_43, %c0_44] : memref<16x128xf32, #tpu.memory_space<vmem>>, vector<16x128xf32>
      tpu.vector_store %arg12[%c0_43, %c0_44], %63 {strides = array<i32>} : memref<16x128xf32, #tpu.memory_space<vmem>>, vector<16x128xf32>,
    } else {
    }
    %c0 = arith.constant 0 : index
    %c0_1 = arith.constant 0 : index
    %3 = vector.load %arg1[%c0, %c0_1] : memref<16x16xbf16, #tpu.memory_space<vmem>>, vector<16x16xbf16>
    %c0_2 = arith.constant 0 : index
    %c0_3 = arith.constant 0 : index
    %4 = vector.load %arg12[%c0_2, %c0_3] : memref<16x128xf32, #tpu.memory_space<vmem>>, vector<16x128xf32>
    %5 = arith.truncf %4 : vector<16x128xf32> to vector<16x128xbf16>
    %cst = arith.constant dense<0.000000e+00> : vector<16x128xf32>
    %6 = tpu.matmul %3, %5, %cst {dimension_numbers = #tpu.dot_dimension_numbers<[1], [0], [0], [1], [0, 0, 1, 1], [], []>} : vector<16x16xbf16>, vector<16x128xbf16>, vector<16x128xf32> -> vector<16x128xf32>
    %c0_4 = arith.constant 0 : index
    %c0_5 = arith.constant 0 : index
    %c0_6 = arith.constant 0 : index
    %7 = vector.load %arg4[%c0_4, %c0_5, %c0_6] : memref<1x16x128xf32, #tpu.memory_space<vmem>>, vector<1x16x128xf32>
    %8 = vector.shape_cast %7 : vector<1x16x128xf32> to vector<16x128xf32>
    %9 = arith.addf %6, %8 : vector<16x128xf32>
    %10 = arith.truncf %9 : vector<16x128xf32> to vector<16x128xbf16>
    %c0_7 = arith.constant 0 : index
    %c0_8 = arith.constant 0 : index
    %c0_9 = arith.constant 0 : index
    %11 = vector.load %arg5[%c0_7, %c0_8, %c0_9] : memref<1x128x128xbf16, #tpu.memory_space<vmem>>, vector<1x128x128xbf16>
    %12 = vector.shape_cast %11 : vector<1x128x128xbf16> to vector<128x128xbf16>
    %cst_10 = arith.constant dense<0.000000e+00> : vector<16x128xf32>
    %13 = tpu.matmul %10, %12, %cst_10 {dimension_numbers = #tpu.dot_dimension_numbers<[1], [0], [0], [1], [0, 0, 1, 1], [], []>} : vector<16x128xbf16>, vector<128x128xbf16>, vector<16x128xf32> -> vector<16x128xf32>
    %c0_11 = arith.constant 0 : index
    %c0_12 = arith.constant 0 : index
    %c0_13 = arith.constant 0 : index
    %14 = vector.load %arg6[%c0_11, %c0_12, %c0_13] : memref<1x1x128xf32, #tpu.memory_space<vmem>>, vector<1x1x128xf32>
    %15 = vector.shape_cast %14 : vector<1x1x128xf32> to vector<1x128xf32>
    %16 = vector.broadcast %15 : vector<1x128xf32> to vector<16x128xf32>
    %17 = arith.addf %13, %16 : vector<16x128xf32>
    %cst_14 = arith.constant 0.000000e+00 : f32
    %18 = vector.broadcast %cst_14 : f32 to vector<16x128xf32>
    %19 = arith.maximumf %17, %18 : vector<16x128xf32>
    %20 = arith.truncf %19 : vector<16x128xf32> to vector<16x128xbf16>
    %c0_15 = arith.constant 0 : index
    %c0_16 = arith.constant 0 : index
    %c0_17 = arith.constant 0 : index
    %21 = vector.load %arg7[%c0_15, %c0_16, %c0_17] : memref<1x128x128xbf16, #tpu.memory_space<vmem>>, vector<1x128x128xbf16>
    %22 = vector.shape_cast %21 : vector<1x128x128xbf16> to vector<128x128xbf16>
    %cst_18 = arith.constant dense<0.000000e+00> : vector<16x128xf32>
    %23 = tpu.matmul %20, %22, %cst_18 {dimension_numbers = #tpu.dot_dimension_numbers<[1], [0], [0], [1], [0, 0, 1, 1], [], []>} : vector<16x128xbf16>, vector<128x128xbf16>, vector<16x128xf32> -> vector<16x128xf32>
    %c0_19 = arith.constant 0 : index
    %c0_20 = arith.constant 0 : index
    %c0_21 = arith.constant 0 : index
    %24 = vector.load %arg8[%c0_19, %c0_20, %c0_21] : memref<1x1x128xf32, #tpu.memory_space<vmem>>, vector<1x1x128xf32>
    %25 = vector.shape_cast %24 : vector<1x1x128xf32> to vector<1x128xf32>
    %26 = vector.broadcast %25 : vector<1x128xf32> to vector<16x128xf32>
    %27 = arith.addf %23, %26 : vector<16x128xf32>
    %c0_22 = arith.constant 0 : index
    %c0_23 = arith.constant 0 : index
    %28 = vector.load %arg3[%c0_22, %c0_23] : memref<16x1xf32, #tpu.memory_space<vmem>>, vector<16x1xf32>
    %29 = vector.broadcast %28 : vector<16x1xf32> to vector<16x128xf32>
    %30 = arith.mulf %27, %29 : vector<16x128xf32>
    %cst_24 = arith.constant dense<0.000000e+00> : vector<128xf32>
    %31 = vector.multi_reduction <add>, %30, %cst_24 [0] : vector<16x128xf32> to vector<128xf32>
    %32 = vector.shape_cast %31 : vector<128xf32> to vector<1x128xf32>
    %33 = vector.broadcast %32 : vector<1x128xf32> to vector<16x128xf32>
    %34 = arith.subf %27, %33 : vector<16x128xf32>
    %35 = arith.mulf %34, %34 : vector<16x128xf32>
    %36 = vector.broadcast %28 : vector<16x1xf32> to vector<16x128xf32>
    %37 = arith.mulf %35, %36 : vector<16x128xf32>
    %cst_25 = arith.constant dense<0.000000e+00> : vector<128xf32>
    %38 = vector.multi_reduction <add>, %37, %cst_25 [0] : vector<16x128xf32> to vector<128xf32>
    %39 = vector.shape_cast %38 : vector<128xf32> to vector<1x128xf32>
    %cst_26 = arith.constant 9.99999974E-6 : f32
    %40 = vector.broadcast %cst_26 : f32 to vector<1x128xf32>
    %41 = arith.addf %39, %40 : vector<1x128xf32>
    %42 = math.rsqrt %41 : vector<1x128xf32>
    %43 = vector.broadcast %42 : vector<1x128xf32> to vector<16x128xf32>
    %44 = arith.mulf %34, %43 : vector<16x128xf32>
    %c0_27 = arith.constant 0 : index
    %c0_28 = arith.constant 0 : index
    %c0_29 = arith.constant 0 : index
    %45 = vector.load %arg9[%c0_27, %c0_28, %c0_29] : memref<1x1x128xf32, #tpu.memory_space<vmem>>, vector<1x1x128xf32>
    %46 = vector.shape_cast %45 : vector<1x1x128xf32> to vector<1x128xf32>
    %47 = vector.broadcast %46 : vector<1x128xf32> to vector<16x128xf32>
    %48 = arith.mulf %44, %47 : vector<16x128xf32>
    %c0_30 = arith.constant 0 : index
    %c0_31 = arith.constant 0 : index
    %c0_32 = arith.constant 0 : index
    %49 = vector.load %arg10[%c0_30, %c0_31, %c0_32] : memref<1x1x128xf32, #tpu.memory_space<vmem>>, vector<1x1x128xf32>
    %50 = vector.shape_cast %49 : vector<1x1x128xf32> to vector<1x128xf32>
    %51 = vector.broadcast %50 : vector<1x128xf32> to vector<16x128xf32>
    %52 = arith.addf %48, %51 : vector<16x128xf32>
    %c1_i32 = arith.constant 1 : i32
    %53 = arith.cmpi ne, %arg0, %c1_i32 : i32
    %54 = arith.extui %53 : i1 to i32
    %c0_i32_33 = arith.constant 0 : i32
    %55 = arith.cmpi ne, %54, %c0_i32_33 : i32
    scf.if %55 {
      %cst_41 = arith.constant 0.000000e+00 : f32
      %63 = vector.broadcast %cst_41 : f32 to vector<16x128xf32>
      %64 = arith.maximumf %52, %63 : vector<16x128xf32>
      %c0_42 = arith.constant 0 : index
      %c0_43 = arith.constant 0 : index
      %65 = vector.load %arg12[%c0_42, %c0_43] : memref<16x128xf32, #tpu.memory_space<vmem>>, vector<16x128xf32>
      tpu.vector_store %arg12[%c0_42, %c0_43], %64 {strides = array<i32>} : memref<16x128xf32, #tpu.memory_space<vmem>>, vector<16x128xf32>,
    } else {
    }
    %c1_i32_34 = arith.constant 1 : i32
    %56 = arith.cmpi eq, %arg0, %c1_i32_34 : i32
    %57 = arith.extui %56 : i1 to i32
    %c0_i32_35 = arith.constant 0 : i32
    %58 = arith.cmpi ne, %57, %c0_i32_35 : i32
    scf.if %58 {
      %c0_41 = arith.constant 0 : index
      %c0_42 = arith.constant 0 : index
      %63 = vector.load %arg12[%c0_41, %c0_42] : memref<16x128xf32, #tpu.memory_space<vmem>>, vector<16x128xf32>
      tpu.vector_store %arg12[%c0_41, %c0_42], %52 {strides = array<i32>} : memref<16x128xf32, #tpu.memory_space<vmem>>, vector<16x128xf32>,
    } else {
    }
    %c0_36 = arith.constant 0 : index
    %c0_37 = arith.constant 0 : index
    %59 = vector.load %arg12[%c0_36, %c0_37] : memref<16x128xf32, #tpu.memory_space<vmem>>, vector<16x128xf32>
    %c0_38 = arith.constant 0 : index
    %c0_39 = arith.constant 0 : index
    %c0_40 = arith.constant 0 : index
    %60 = vector.load %arg11[%c0_38, %c0_39, %c0_40] : memref<1x16x128xf32, #tpu.memory_space<vmem>>, vector<1x16x128xf32>
    %61 = vector.shape_cast %60 : vector<1x16x128xf32> to vector<16x128xf32>
    %62 = vector.shape_cast %59 : vector<16x128xf32> to vector<1x16x128xf32>
    tpu.vector_store %arg11[%c0_38, %c0_39, %c0_40], %62 {strides = array<i32>} : memref<1x16x128xf32, #tpu.memory_space<vmem>>, vector<1x16x128xf32>,
    return
  }
  func.func @transform_0(%arg0: i32) -> (i32, i32) {
    %c0_i32 = arith.constant 0 : i32
    %c0_i32_0 = arith.constant 0 : i32
    %c0_i32_1 = arith.constant 0 : i32
    return %c0_i32, %c0_i32_0 : i32, i32
  }
  func.func @transform_1(%arg0: i32) -> (i32, i32) {
    %c0_i32 = arith.constant 0 : i32
    %c0_i32_0 = arith.constant 0 : i32
    %c0_i32_1 = arith.constant 0 : i32
    return %c0_i32, %c0_i32_0 : i32, i32
  }
  func.func @transform_2(%arg0: i32) -> (i32, i32) {
    %c0_i32 = arith.constant 0 : i32
    %c0_i32_0 = arith.constant 0 : i32
    %c0_i32_1 = arith.constant 0 : i32
    return %c0_i32, %c0_i32_0 : i32, i32
  }
  func.func @transform_3(%arg0: i32) -> (i32, i32, i32) {
    %c0_i32 = arith.constant 0 : i32
    %c0_i32_0 = arith.constant 0 : i32
    %c0_i32_1 = arith.constant 0 : i32
    return %arg0, %c0_i32, %c0_i32_0 : i32, i32, i32
  }
  func.func @transform_4(%arg0: i32) -> (i32, i32, i32) {
    %c0_i32 = arith.constant 0 : i32
    %c0_i32_0 = arith.constant 0 : i32
    %c0_i32_1 = arith.constant 0 : i32
    return %arg0, %c0_i32, %c0_i32_0 : i32, i32, i32
  }
  func.func @transform_5(%arg0: i32) -> (i32, i32, i32) {
    %c0_i32 = arith.constant 0 : i32
    %c0_i32_0 = arith.constant 0 : i32
    %c0_i32_1 = arith.constant 0 : i32
    return %arg0, %c0_i32, %c0_i32_0 : i32, i32, i32
  }
  func.func @transform_6(%arg0: i32) -> (i32, i32, i32) {
    %c0_i32 = arith.constant 0 : i32
    %c0_i32_0 = arith.constant 0 : i32
    %c0_i32_1 = arith.constant 0 : i32
    return %arg0, %c0_i32, %c0_i32_0 : i32, i32, i32
  }
  func.func @transform_7(%arg0: i32) -> (i32, i32, i32) {
    %c0_i32 = arith.constant 0 : i32
    %c0_i32_0 = arith.constant 0 : i32
    %c0_i32_1 = arith.constant 0 : i32
    return %arg0, %c0_i32, %c0_i32_0 : i32, i32, i32
  }
  func.func @transform_8(%arg0: i32) -> (i32, i32, i32) {
    %c0_i32 = arith.constant 0 : i32
    %c0_i32_0 = arith.constant 0 : i32
    %c0_i32_1 = arith.constant 0 : i32
    return %arg0, %c0_i32, %c0_i32_0 : i32, i32, i32
  }
  func.func @transform_9(%arg0: i32) -> (i32, i32, i32) {
    %c0_i32 = arith.constant 0 : i32
    %c0_i32_0 = arith.constant 0 : i32
    %c0_i32_1 = arith.constant 0 : i32
    return %arg0, %c0_i32, %c0_i32_0 : i32, i32, i32
  }
  func.func @transform_10(%arg0: i32) -> (i32, i32, i32) {
    %c0_i32 = arith.constant 0 : i32
    %c0_i32_0 = arith.constant 0 : i32
    %c0_i32_1 = arith.constant 0 : i32
    return %arg0, %c0_i32, %c0_i32_0 : i32, i32, i32
  }
}

</mosaic_0001>

<bundles_post_ra>
// kernel: tpu_custom_call.1
= control target key start
LH: loop header
LB: loop body
LE: loop exit
PB: predicated region body
PF: predicated region fallthrough
CT: control target
= control target key end

     0   :  { %s1955_s0 = inlined_call_operand.hbm [shape: bf16[16,16], index: 0, kind: input, shape index: {}]   ;;  %s1956_s1 = inlined_call_operand.vmem [shape: f32[16,128], index: 1, kind: input, shape index: {}]   ;;  %s1957_s2 = inlined_call_operand.vmem [shape: f32[16,1], index: 2, kind: input, shape index: {}]   ;;  %s1958_s3 = inlined_call_operand.hbm [shape: f32[2,16,128], index: 3, kind: input, shape index: {}]   ;;  %s1959_s4 = inlined_call_operand.hbm [shape: bf16[2,128,128], index: 4, kind: input, shape index: {}]   ;;  %s1960_s5 = inlined_call_operand.vmem [shape: f32[2,1,128], index: 5, kind: input, shape index: {}]   ;;  %s1961_s6 = inlined_call_operand.hbm [shape: bf16[2,128,128], index: 6, kind: input, shape index: {}]   ;;  %s1962_s7 = inlined_call_operand.vmem [shape: f32[2,1,128], index: 7, kind: input, shape index: {}]   ;;  %s1963_s8 = inlined_call_operand.vmem [shape: f32[2,1,128], index: 8, kind: input, shape index: {}]   ;;  %s1964_s9 = inlined_call_operand.vmem [shape: f32[2,1,128], index: 9, kind: input, shape index: {}]   ;;  %s1965_s10 = inlined_call_operand.hbm [shape: f32[2,16,128], index: 10, kind: output, shape index: {}]  }
   0x1   :  { %1987 = sst [smem:[#allocation22_spill]] %s1957_s2 }
   0x2   :  { %1988 = sst [smem:[#allocation23_spill]] %s1958_s3 }
   0x3   :  { %1989 = sst [smem:[#allocation24_spill]] %s1965_s10 }
   0x4   :  { %15 = vsyncpa [#allocation4], 0 }
   0x5   :  { %16 = vsyncpa [#allocation7], 0 }
   0x6   :  { %18 = vsyncpa [#allocation7 + $0x1], 0 }
   0x7   :  { %19 = vsyncpa [#allocation10], 0 }
   0x8   :  { %21 = vsyncpa [#allocation10 + $0x1], 0 }
   0x9   :  { %22 = vsyncpa [#allocation5], 0 }
   0xa   :  { %24 = vsyncpa [#allocation5 + $0x1], 0  ;;  %s1550_s13 = smov 0   ;;  %s1552_s14 = smov 0  }
   0xb   :  { %s1554_s15 = smov 0   ;;  %s1556_s16 = smov 0  }
   0xc LB: > { %1990 = sst [smem:[#allocation16_spill]] %s1467_s13  ;;  %s1571_s17 = sadd.s32 1, %s1479_s16   ;;  %s1479_s16 = sphi %s1556_s16, %s2023_s16   ;;  %s1475_s15 = sphi %s1554_s15, %s2025_s15   ;;  %s1471_s14 = sphi %s1552_s14, %s2027_s14   ;;  %s1467_s13 = sphi %s1550_s13, %s2026_s13  }
   0xd   : > { %1991 = sst [smem:[#allocation17_spill]] %s1475_s15  ;;  %s100_s18 = sadd.s32 1, %s1475_s15 }
   0xe   : > { %1992 = sst [smem:[#allocation18_spill]] %s1571_s17  ;;  %s97_s19 = ssub.s32 %s1479_s16, %s1571_s17 }
   0xf   : > { %p1966_p0 = scmp.ne.s32.totalorder %s1475_s15, %s1471_s14  ;;  %p98_p1 = scmp.eq.s32.totalorder %s97_s19, 0 }
  0x10   : > { %p108_p2 = scmp.eq.s32.totalorder %s1479_s16, 0  ;;  %p1222_p4 = scmp.lt.s32.totalorder %s1479_s16, 2 }
  0x11   : > { %s1582_s20 = scalar_select %p98_p1, %s1475_s15, %s100_s18  }
  0x12   : > { %p109_p5 = por %p108_p2, %p1966_p0  ;;  %s338_s21 = sand.u32 1, %s1479_s16  }
  0x13   : > { %1993 = sst [smem:[#allocation19_spill]] %s1582_s20  ;;  %s1589_s22 = sand.u32 1, %s1475_s15  }
  0x14   : > { %s1076_s23 = sshll.u32 %s1589_s22, 4  ;;  %s1121_s24 = sshll.u32 %s1479_s16, 8 }
  0x15   : > { %s1994_s3 = sld [smem:[#allocation23_spill]]  ;;  %s342_s28 = scalar_lea.vmem [#allocation6], %s1076_s23 }
  0x16   : > { %s349_s29 = sshll.u32 %s342_s28, 4  ;;  %p1598_p6 = pnand %p1222_p4, %p109_p5  ;;  %s1602_s29 = int_to_ptr.vmem [resolvable:$true] %s349_s29 }
  0x17   : > { %s1604_s11 = scalar_lea.sflag [#allocation7], %s338_s21 }
  0x18   : > { %s1995_s30 = scalar_select %p1598_p6, 1, 0 }
  0x19   : > { %p1610_p8 = pneg %p1598_p6 }
  0x1b   : > { %s1596_s27 = scalar_lea.hbm %s1994_s3, %s1121_s24  ;;  %s1292_s24 = scalar_lea.hbm %s1994_s3, 512 }
  0x1c   : > { %s1287_s12 = scalar_lea.hbm %s1596_s27, 256  ;;  %p1293_p11 = scmp.lt.u32.totalorder %s1596_s27, %s1994_s3 }
  0x1d   : > { %p1288_p7 = scmp.ne.s32.totalorder %s1596_s27, %s1287_s12  ;;  %p1294_p12 = scmp.lt.u32.totalorder %s1292_s24, %s1287_s12 }
  0x1e   : > { %s1996_s18 = scalar_select %p1610_p8, 1, 0 }
  0x1f   : > { %p1290_p9 = pnand %p1610_p8, %p1288_p7  ;;  %p1295_p13 = por %p1294_p12, %p1293_p11 }
  0x20   : > { %p1296_p1 = scmp.lt.u32.totalorder %s1287_s12, %s1596_s27 }
  0x21   : > { %p1291_p10 = pneg %p1290_p9 }
  0x22   : > { %p1297_p2 = por %p1296_p1, %p1295_p13 }
  0x24   : > { %p1298_p4 = pnand %p1297_p2, %p1291_p10 }
  0x26   : > { %1301 = shalt.err (!%p1298_p4)
}
  0x27   : > { %s1302_s21 = scalar_lea.vmem %s1602_s29, 256  ;;  %s1481_s28 = smov [#allocation6]  }
  0x28   : > { %p1303_p5 = scmp.ne.s32.totalorder %s1602_s29, %s1302_s21  ;;  %s1307_s19 = sshll.u32 %s1481_s28, 4  ;;  %s1308_s19 = int_to_ptr.vmem [resolvable:$false] %s1307_s19 }
  0x29   : > { %s1309_s23 = scalar_lea.vmem %s1308_s19, 512  ;;  %p1310_p3 = scmp.lt.s32.totalorder %s1602_s29, %s1308_s19 }
  0x2a   : > { %p1305_p7 = pnand %p1303_p5, %p1610_p8  ;;  %p1311_p0 = scmp.lt.s32.totalorder %s1309_s23, %s1302_s21 }
  0x2c   : > { %p1306_p9 = pneg %p1305_p7  ;;  %p1312_p11 = por %p1311_p0, %p1310_p3 }
  0x2e   : > { %p1313_p12 = pnand %p1312_p11, %p1306_p9 }
  0x30   : > { %1316 = shalt.err (!%p1313_p12)
}
  0x31   : > { %s1482_s12 = smov 128   ;;  %s1483_s24 = smov 8  }
  0x32   : > { %1210 = dma.hbm_to_vmem [thread:$0]  (!%p1598_p6), %s1596_s27, 256, %s1602_s29, %s1604_s11, %s1482_s12, %s1482_s12, %s1483_s24  }
  0x33   : > { %s1635_s25 = sadd.s32 4294967295, %s1479_s16   ;;  %s1072_s26 = sadd.s32 4294967294, %s1479_s16  }
  0x34   : > { %p113_p0 = scmp.ne.s32.totalorder %s1471_s14, %s1467_s13  ;;  %p1977_p3 = scmp.eq.s32.totalorder %s1635_s25, 0 }
  0x35   : > { %p1976_p10 = scmp.eq.s32.totalorder %s1635_s25, 1  ;;  %p299_p13 = scmp.eq.s32.totalorder %s1072_s26, 1 }
  0x36   : > { %p1644_p1 = por %p1977_p3, %p113_p0  ;;  %p1073_p2 = scmp.ge.s32.totalorder %s1479_s16, 1 }
  0x37   : > { %p1998_p4 = scmp.ne.s32.totalorder %s1475_s15, %s1471_s14  ;;  %p1658_p7 = por %p299_p13, %p113_p0 }
  0x38   : > { %s1997_s27 = scalar_select %p1644_p1, 1, 0 }
  0x39   : > { %p1654_p5 = por %p1976_p10, %p1998_p4  ;;  %p306_p9 = scmp.lt.s32.totalorder %s1479_s16, 3 }
  0x3a   : > { %s2001_s21 = scalar_select %p1658_p7, 1, 0 }
  0x3b   : > { %s1999_s29 = scalar_select %p1654_p5, 1, 0 }
  0x3c   : > { %2002 = sst [smem:[#allocation21_spill]] %s2001_s21  ;;  %p1664_p12 = pnand %p1073_p2, %p306_p9 }
  0x3d   : > { %2000 = sst [smem:[#allocation20_spill]] %s1999_s29  ;;  %s1484_s19 = smov [#allocation3]  }
  0x3e   : > { %s2003_s28 = scalar_select %p1664_p12, 1, 0 }
  0x3f   : > { %s318_s23 = sshll.u32 %s1484_s19, 4  ;;  %p1203_p4 = pneg %p1664_p12  ;;  %s1668_s23 = int_to_ptr.vmem [resolvable:$true] %s318_s23 }
  0x40   : > { %s1985_s12 = sshll.u32 %s1589_s22, 6  ;;  %s1986_s24 = sshll.u32 %s1479_s16, 10 }
  0x41   : > { %p1676_p0 = pnand %p1203_p4, %p1977_p3  ;;  %s1685_s15 = scalar_lea.hbm %s1959_s4, %s1986_s24 }
  0x42   : > { %s363_s19 = scalar_lea.vmem [#allocation8], %s1985_s12  ;;  %s1317_s10 = scalar_lea.hbm %s1955_s0, 128 }
  0x43   : > { %s370_s17 = sshll.u32 %s363_s19, 4  ;;  %p1318_p13 = scmp.ne.s32.totalorder %s1955_s0, %s1317_s10  ;;  %s1689_s17 = int_to_ptr.vmem [resolvable:$true] %s370_s17 }
  0x44   : > { %p1319_p2 = pneg %p1676_p0  ;;  %p1324_p10 = scmp.lt.u32.totalorder %s1317_s10, %s1955_s0 }
  0x46   : > { %p1320_p9 = pnand %p1319_p2, %p1318_p13 }
  0x48   : > { %p1321_p4 = pneg %p1320_p9 }
  0x4a   : > { %p1326_p11 = pnand %p1324_p10, %p1321_p4 }
  0x4c   : > { %1329 = shalt.err (!%p1326_p11)
}
  0x4d   : > { %s1330_s19 = scalar_lea.vmem %s1668_s23, 128  ;;  %p1338_p1 = scmp.lt.s32.totalorder %s1668_s23, %s1668_s23 }
  0x4e   : > { %p1331_p3 = scmp.ne.s32.totalorder %s1668_s23, %s1330_s19  ;;  %p1339_p12 = scmp.lt.s32.totalorder %s1330_s19, %s1330_s19 }
  0x50   : > { %p1333_p7 = pnand %p1331_p3, %p1319_p2  ;;  %p1340_p6 = por %p1339_p12, %p1338_p1 }
  0x52   : > { %p1334_p5 = pneg %p1333_p7 }
  0x54   : > { %p1341_p8 = pnand %p1340_p6, %p1334_p5 }
  0x56   : > { %1344 = shalt.err (!%p1341_p8)
}
  0x57   : > { %s1485_s2 = smov 64   ;;  %s1486_s10 = smov 4  }
  0x58   : > { %1206 = dma.hbm_to_vmem [thread:$0]  (!%p1676_p0), %s1955_s0, 128, %s1668_s23, [#allocation4], %s1485_s2, %s1485_s2, %s1486_s10  }
  0x59   : > { %s1345_s21 = scalar_lea.hbm %s1685_s15, 1024  ;;  %p2005_p8 = scmp.ne.s32.totalorder %s1996_s18, 0 }
  0x5a   : > { %p1346_p6 = scmp.ne.s32.totalorder %s1685_s15, %s1345_s21  ;;  %s1350_s19 = scalar_lea.hbm %s1959_s4, 2048 }
  0x5b   : > { %p1351_p1 = scmp.lt.u32.totalorder %s1685_s15, %s1959_s4  ;;  %p1352_p5 = scmp.lt.u32.totalorder %s1350_s19, %s1345_s21 }
  0x5c   : > { %p1348_p3 = pnand %p1346_p6, %p2005_p8  ;;  %p1354_p11 = scmp.lt.u32.totalorder %s1345_s21, %s1685_s15 }
  0x5d   : > { %p1353_p7 = por %p1352_p5, %p1351_p1 }
  0x5e   : > { %p1349_p10 = pneg %p1348_p3 }
  0x5f   : > { %p1355_p12 = por %p1354_p11, %p1353_p7 }
  0x61   : > { %p1356_p13 = pnand %p1355_p12, %p1349_p10 }
  0x63   : > { %1359 = shalt.err (!%p1356_p13)
}
  0x64   : > { %s1360_s23 = scalar_lea.vmem %s1689_s17, 1024  ;;  %s1487_s26 = smov [#allocation8]  }
  0x65   : > { %p1361_p0 = scmp.ne.s32.totalorder %s1689_s17, %s1360_s23  ;;  %s1365_s13 = sshll.u32 %s1487_s26, 4  ;;  %s1366_s13 = int_to_ptr.vmem [resolvable:$false] %s1365_s13 }
  0x66   : > { %s1367_s12 = scalar_lea.vmem %s1366_s13, 2048  ;;  %p1368_p4 = scmp.lt.s32.totalorder %s1689_s17, %s1366_s13 }
  0x67   : > { %p1363_p2 = pnand %p1361_p0, %p2005_p8  ;;  %p1369_p6 = scmp.lt.s32.totalorder %s1367_s12, %s1360_s23 }
  0x69   : > { %p1364_p9 = pneg %p1363_p2  ;;  %p1370_p3 = por %p1369_p6, %p1368_p4 }
  0x6b   : > { %p1371_p1 = pnand %p1370_p3, %p1364_p9 }
  0x6d   : > { %1374 = shalt.err (!%p1371_p1)
}
  0x6e   : > { %p2006_p10 = scmp.ne.s32.totalorder %s1995_s30, 0  ;;  %s2007_s24 = sshll.u32 %s1479_s16, 10 }
  0x6f   : > { %s1745_s3 = scalar_lea.hbm %s1961_s6, %s2007_s24  ;;  %s2008_s20 = sshll.u32 %s1589_s22, 6 }
  0x70   : > { %1213 = dma.hbm_to_vmem [thread:$0]  (!%p2006_p10), %s1685_s15, 1024, %s1689_s17, %s1604_s11, %s1485_s2, %s1485_s2, %s1486_s10  }
  0x71   : > { %s390_s19 = scalar_lea.vmem [#allocation9], %s2008_s20  ;;  %s387_s26 = scalar_lea.sflag [#allocation10], %s1589_s22 }
  0x72   : > { %s397_s23 = sshll.u32 %s390_s19, 4  ;;  %s1375_s13 = scalar_lea.hbm %s1745_s3, 1024  ;;  %s1749_s23 = int_to_ptr.vmem [resolvable:$true] %s397_s23 }
  0x73   : > { %p1376_p5 = scmp.ne.s32.totalorder %s1745_s3, %s1375_s13  ;;  %s1380_s11 = scalar_lea.hbm %s1961_s6, 2048 }
  0x74   : > { %p1381_p12 = scmp.lt.u32.totalorder %s1745_s3, %s1961_s6  ;;  %p1382_p13 = scmp.lt.u32.totalorder %s1380_s11, %s1375_s13 }
  0x75   : > { %p1378_p7 = pnand %p1376_p5, %p2005_p8  ;;  %p1384_p2 = scmp.lt.u32.totalorder %s1375_s13, %s1745_s3 }
  0x76   : > { %p1383_p0 = por %p1382_p13, %p1381_p12 }
  0x77   : > { %p1379_p11 = pneg %p1378_p7 }
  0x78   : > { %p1385_p9 = por %p1384_p2, %p1383_p0 }
  0x7a   : > { %p1386_p4 = pnand %p1385_p9, %p1379_p11 }
  0x7c   : > { %1389 = shalt.err (!%p1386_p4)
}
  0x7d   : > { %s1390_s29 = scalar_lea.vmem %s1749_s23, 1024  ;;  %s1488_s21 = smov [#allocation9]  }
  0x7e   : > { %p1391_p6 = scmp.ne.s32.totalorder %s1749_s23, %s1390_s29  ;;  %s1395_s20 = sshll.u32 %s1488_s21, 4  ;;  %s1396_s20 = int_to_ptr.vmem [resolvable:$false] %s1395_s20 }
  0x7f   : > { %s1397_s19 = scalar_lea.vmem %s1396_s20, 2048  ;;  %p1398_p5 = scmp.lt.s32.totalorder %s1749_s23, %s1396_s20 }
  0x80   : > { %p1393_p3 = pnand %p1391_p6, %p2005_p8  ;;  %p1399_p7 = scmp.lt.s32.totalorder %s1397_s19, %s1390_s29 }
  0x82   : > { %p1394_p1 = pneg %p1393_p3  ;;  %p1400_p12 = por %p1399_p7, %p1398_p5 }
  0x84   : > { %p1401_p13 = pnand %p1400_p12, %p1394_p1 }
  0x86   : > { %1404 = shalt.err (!%p1401_p13)
}
  0x87   : > { %1216 = dma.hbm_to_vmem [thread:$0]  (!%p2006_p10), %s1745_s3, 1024, %s1749_s23, %s387_s26, %s1485_s2, %s1485_s2, %s1486_s10  }
  0x88   : > { %p2009_p8 = scmp.ne.s32.totalorder %s2003_s28, 0 }
  0x89   : > { %p2010_p11 = scmp.eq.s32.totalorder (!%p2009_p8), %s1635_s25, 0 }
  0x8a   : > { %427 = sbr.rel (%p2009_p8) target bundleno = 920 (0x398), region = 60 }
  0x91   : > { %1450 = dma.done.wait (%p2010_p11), [#allocation4], 128   ;;  %p2011_p0 = pmov %p2010_p11 }
  0x92   : > { %s433_s30 = sand.u32 1, %s1635_s25   ;;  %s1786_s18 = sand.u32 1, %s1471_s14  }
  0x93   : > { %1452 = vsyncadd (%p2011_p0), [#allocation4], 4294967168  ;;  %s1087_s22 = sshll.u32 %s1786_s18, 4  ;;  %s434_s13 = scalar_lea.sflag [#allocation7], %s433_s30 }
  0x94   : > { %s1789_s15 = scalar_lea.vmem [#allocation6], %s1087_s22  ;;  %p2012_p10 = scmp.ne.s32.totalorder %s1997_s27, 0 }
  0x96   : > { %1454 = dma.done.wait (%p2012_p10), %s434_s13, 1280  }
  0x97   : > { %1456 = vsyncadd (%p2012_p10), %s434_s13, 4294966016  ;;  %s1088_s28 = sshll.u32 %s1786_s18, 6  ;;  %s452_s10 = scalar_lea.sflag [#allocation10], %s1786_s18 }
  0x98   : > { %s1796_s2 = scalar_lea.vmem [#allocation8], %s1088_s28  ;;  %s1799_s3 = scalar_lea.vmem [#allocation9], %s1088_s28 }
  0x99   : > { %1458 = dma.done.wait (%p2012_p10), %s452_s10, 1024  }
  0x9a   : > { %1460 = vsyncadd (%p2012_p10), %s452_s10, 4294966272  ;;  %p514_p2 = scmp.lt.s32.totalorder %s1635_s25, 1  ;;  %s1825_s28 = scalar_lea.vmem [#allocation11], %s1087_s22 }
  0x9b   : > { %p2013_p9 = scmp.ne.s32.totalorder %s1635_s25, 0 }
  0x9c   : > { %s1807_s23 = scalar_select %p514_p2, %s1635_s25, 1 }
  0x9d   : > { %530 = sbr.rel (%p2013_p9) target bundleno = 164 (0xa4), region = 80  ;;  %v531_v0 = vld [vmem:[%s1956_s1] sm:$0xff] (!%p2013_p9)  ;;  %v532_v1 = vld [vmem:[%s1956_s1 + $0x8] sm:$0xff] (!%p2013_p9) }
  0x9e   : > { %s516_s11 = scalar_lea.vmem %s1960_s5, %s1807_s23  ;;  %s519_s29 = scalar_lea.vmem %s1962_s7, %s1807_s23  ;;  %533 = vst [vmem:[#allocation2] sm:$0xff] (!%p2013_p9), %v531_v0  ;;  %534 = vst [vmem:[#allocation2 + $0x8] sm:$0xff] (!%p2013_p9), %v532_v1 }
  0x9f   : > { %s522_s20 = scalar_lea.vmem %s1963_s8, %s1807_s23  ;;  %s525_s13 = scalar_lea.vmem %s1964_s9, %s1807_s23 }
  0xa4 PF: > { %v1489_v4 = vmov 0.0   ;;  %vm1490_vm0 = vmmov 0   ;;  %v1268_v6 = vld [vmem:[#allocation3] sm:$0xff]   ;;  %v1269_v7 = vld [vmem:[%s1796_s2] sm:$0xff]   ;;  %vm547_vm1 = vcmask 130048   ;;  %v1270_v8 = vld [vmem:[%s1796_s2 + $0x8] sm:$0xff]  }
  0xa5   : > { %v537_v2 = vld [vmem:[#allocation2] sm:$0xff]  ;;  %v538_v3 = vld [vmem:[#allocation2 + $0x8] sm:$0xff]  ;;  %1145 = vmatprep.subr.bf16.mxu0 %v1489_v4  ;;  %1147 = vmatprep.mubr.msk.bf16.mxu0 %vm1490_vm0, %v1489_v4  ;;  %v1272_v10 = vld [vmem:[%s1796_s2 + $0x18] sm:$0xff]   ;;  %s2014_s24 = sld [smem:[#allocation22_spill]]  ;;  %v1491_v33 = vmov 0   ;;  %p2015_p4 = scmp.eq.s32.totalorder %s1635_s25, 1 }
  0xa6   : > { %v539_v5 = vpack.c.bf16 %v538_v3, %v537_v2  ;;  %1151 = vmatprep.subr.bf16.mxu1 %v1489_v4  ;;  %1167 = vmatprep.mubr.msk.bf16.mxu1 %vm1490_vm0, %v1489_v4  ;;  %v1271_v9 = vld [vmem:[%s1796_s2 + $0x10] sm:$0xff]   ;;  %v1273_v11 = vld [vmem:[%s1796_s2 + $0x20] sm:$0xff]   ;;  %v1274_v12 = vld [vmem:[%s1796_s2 + $0x28] sm:$0xff]  }
  0xa7   : > { %1152 = vmatpush3.bf16.msra.mxu1 %v1269_v7  ;;  %v1275_v13 = vld [vmem:[%s1796_s2 + $0x30] sm:$0xff]   ;;  %v1276_v14 = vld [vmem:[%s1796_s2 + $0x38] sm:$0xff]   ;;  %v1277_v15 = vld [vmem:[%s1799_s3] sm:$0xff]   ;;  %1267 = vset.pattern.permute.xlu0 %v1491_v33 }
  0xa8   : > { %1146 = vmatpush3.bf16.msra.mxu0 %v539_v5  ;;  %1153 = vmatprep.subr.bf16.mxu1 %v1489_v4  ;;  %v1278_v16 = vld [vmem:[%s1799_s3 + $0x8] sm:$0xff]   ;;  %v1279_v17 = vld [vmem:[%s1799_s3 + $0x10] sm:$0xff]   ;;  %v1280_v18 = vld [vmem:[%s1799_s3 + $0x18] sm:$0xff]  }
  0xa9   : > { %1171 = vmatprep.subr.bf16.mxu0 %v1489_v4  ;;  %v1281_v19 = vld [vmem:[%s1799_s3 + $0x20] sm:$0xff]   ;;  %v1282_v20 = vld [vmem:[%s1799_s3 + $0x28] sm:$0xff]   ;;  %v1283_v30 = vld [vmem:[%s1799_s3 + $0x30] sm:$0xff]  }
  0xaa   : > { %v540_v21 = vld [vmem:[%s1789_s15] sm:$0xff]  ;;  %v541_v23 = vld [vmem:[%s1789_s15 + $0x8] sm:$0xff] }
  0xab   : > { %1148 = vmatmul.mubr.msk.bf16.vlgmr.msra.gmra.mrb[0].mxu0 %vm547_vm1, %v1268_v6  ;;  %1154 = vmatpush3.bf16.msra.mxu1 %v1270_v8  ;;  %v1284_v31 = vld [vmem:[%s1799_s3 + $0x38] sm:$0xff]   ;;  %v820_v32 = vld [vmem:[%s2014_s24] sm:$0xff]  ;;  %v821_v34 = vld [vmem:[%s2014_s24 + $0x8] sm:$0xff] }
  0xac   : > { %1187 = vmatprep.mubr.msk.bf16.mxu0 %vm1490_vm0, %v1489_v4  ;;  %1155 = vmatprep.subr.bf16.mxu1 %v1489_v4  ;;  %v1094_v35 = vld [vmem:[%s516_s11] ss:$0 sm:$0xff] }
  0xad   : > { %1172 = vmatpush3.bf16.msra.mxu0 %v1277_v15  ;;  %824 = vperm.xlu0 %1267, %v820_v32   ;;  %v1103_v46 = vld [vmem:[%s519_s29] ss:$0 sm:$0xff] }
  0xae   : > { %1173 = vmatprep.subr.bf16.mxu0 %v1489_v4 }
  0xaf   : > { %1156 = vmatpush3.bf16.msra.mxu1 %v1271_v9 }
  0xb0   : > { %1157 = vmatprep.subr.bf16.mxu1 %v1489_v4 }
  0xb1   : > { %1174 = vmatpush3.bf16.msra.mxu0 %v1278_v16  ;;  %829 = vperm.xlu0 %1267, %v821_v34  }
  0xb2   : > { %1175 = vmatprep.subr.bf16.mxu0 %v1489_v4 }
  0xb3   : > { %1158 = vmatpush3.bf16.msra.mxu1 %v1272_v10 }
  0xb4   : > { %1159 = vmatprep.subr.bf16.mxu1 %v1489_v4 }
  0xb5   : > { %1176 = vmatpush3.bf16.msra.mxu0 %v1279_v17  ;;  %v1113_v17 = vld [vmem:[%s525_s13] ss:$0 sm:$0xff] }
  0xb6   : > { %1177 = vmatprep.subr.bf16.mxu0 %v1489_v4 }
  0xb7   : > { %1160 = vmatpush3.bf16.msra.mxu1 %v1273_v11 }
  0xb8   : > { %1161 = vmatprep.subr.bf16.mxu1 %v1489_v4 }
  0xb9   : > { %1178 = vmatpush3.bf16.msra.mxu0 %v1280_v18 }
  0xba   : > { %1179 = vmatprep.subr.bf16.mxu0 %v1489_v4 }
  0xbb   : > { %1162 = vmatpush3.bf16.msra.mxu1 %v1274_v12 }
  0xbc   : > { %1163 = vmatprep.subr.bf16.mxu1 %v1489_v4 }
  0xbd   : > { %1180 = vmatpush3.bf16.msra.mxu0 %v1281_v19 }
  0xbe   : > { %1181 = vmatprep.subr.bf16.mxu0 %v1489_v4 }
  0xbf   : > { %1164 = vmatpush3.bf16.msra.mxu1 %v1275_v13 }
  0xc0   : > { %1165 = vmatprep.subr.bf16.mxu1 %v1489_v4 }
  0xc1   : > { %1182 = vmatpush3.bf16.msra.mxu0 %v1282_v20 }
  0xc2   : > { %1183 = vmatprep.subr.bf16.mxu0 %v1489_v4 }
  0xc3   : > { %1166 = vmatpush3.bf16.msra.mxu1 %v1276_v14  ;;  %v1112_v14 = vld [vmem:[%s522_s20] ss:$0 sm:$0xff] }
  0xc5   : > { %1184 = vmatpush3.bf16.msra.mxu0 %v1283_v30 }
  0xc6   : > { %1185 = vmatprep.subr.bf16.mxu0 %v1489_v4 }
  0xc9   : > { %1186 = vmatpush3.bf16.msra.mxu0 %v1284_v31 }
 0x12c   : > { %v825_v45 = vpop.permute.xlu0 %824 }
 0x130   : > { %v830_v53 = vpop.permute.xlu0 %829 }
 0x17e   : > { %v585_v22 = vpop.f32.mrb[0].mxu0 }
 0x17f   : > { %v1149_v24 = vpop.f32.mrb[1].mxu0  ;;  %v586_v26 = vadd.f32 %v585_v22, %v540_v21 }
 0x180   : > { %v588_v25 = vpop.f32.mrb[2].mxu0 }
 0x181   : > { %v589_v27 = vadd.f32 %v588_v25, %v541_v23  ;;  %v1150_v28 = vpop.f32.mrb[3].mxu0 }
 0x183   : > { %v592_v29 = vpack.c.bf16 %v589_v27, %v586_v26 }
 0x185   : > { %1168 = vmatmul.mubr.bf16.vlgmr.msra.gmra.mrb[0].mxu1 %v592_v29 }
 0x258   : > { %v698_v36 = vpop.f32.mrb[0].mxu1 }
 0x259   : > { %v699_v37 = vadd.f32 %v1094_v35, %v698_v36  ;;  %v1169_v38 = vpop.f32.mrb[1].mxu1 }
 0x25a   : > { %v701_v39 = vpop.f32.mrb[2].mxu1 }
 0x25b   : > { %v702_v40 = vadd.f32 %v1094_v35, %v701_v39  ;;  %v1170_v41 = vpop.f32.mrb[3].mxu1  ;;  %v705_v42 = vmax.f32 %v699_v37, 0.0 }
 0x25d   : > { %v706_v43 = vmax.f32 %v702_v40, 0.0 }
 0x25f   : > { %v707_v44 = vpack.c.bf16 %v706_v43, %v705_v42 }
 0x261   : > { %1188 = vmatmul.mubr.bf16.vlgmr.msra.gmra.mrb[4].mxu0 %v707_v44 }
 0x334   : > { %v813_v47 = vpop.f32.mrb[4].mxu0 }
 0x335   : > { %v814_v48 = vadd.f32 %v1103_v46, %v813_v47  ;;  %v1189_v49 = vpop.f32.mrb[5].mxu0 }
 0x336   : > { %v816_v50 = vpop.f32.mrb[6].mxu0 }
 0x337   : > { %v817_v51 = vadd.f32 %v1103_v46, %v816_v50  ;;  %v1190_v52 = vpop.f32.mrb[7].mxu0  ;;  %v832_v54 = vmul.f32 %v825_v45, %v814_v48 }
 0x339   : > { %v833_v55 = vmul.f32 %v830_v53, %v817_v51 }
 0x33b   : > { %v834_v56 = vadd.f32 %v833_v55, %v832_v54 }
 0x33d   : > { %v835_v57 = vrot.slane %v834_v56, 4 }
 0x33f   : > { %v836_v58 = vadd.f32 %v835_v57, %v834_v56 }
 0x341   : > { %v837_v59 = vrot.slane %v836_v58, 2 }
 0x343   : > { %v838_v60 = vadd.f32 %v837_v59, %v836_v58 }
 0x345   : > { %v839_v61 = vrot.slane %v838_v60, 1 }
 0x347   : > { %v840_v62 = vadd.f32 %v839_v61, %v838_v60 }
 0x349   : > { %v841_v63 = vsub.f32 %v814_v48, %v840_v62  ;;  %v842_v0 = vsub.f32 %v817_v51, %v840_v62 }
 0x34b   : > { %v843_v1 = vmul.f32 %v841_v63, %v841_v63  ;;  %v844_v2 = vmul.f32 %v842_v0, %v842_v0 }
 0x34d   : > { %v845_v3 = vmul.f32 %v843_v1, %v825_v45  ;;  %v846_v4 = vmul.f32 %v844_v2, %v830_v53 }
 0x34f   : > { %v847_v5 = vadd.f32 %v846_v4, %v845_v3 }
 0x351   : > { %v848_v6 = vrot.slane %v847_v5, 4 }
 0x353   : > { %v849_v7 = vadd.f32 %v848_v6, %v847_v5 }
 0x355   : > { %v850_v8 = vrot.slane %v849_v7, 2 }
 0x357   : > { %v851_v9 = vadd.f32 %v850_v8, %v849_v7 }
 0x359   : > { %v852_v10 = vrot.slane %v851_v9, 1 }
 0x35b   : > { %v853_v11 = vadd.f32 %v852_v10, %v851_v9 }
 0x35d   : > { %v854_v12 = vadd.f32 1e-05, %v853_v11 }
 0x35f   : > { %1285 = vrsqrt.f32 %v854_v12 }
 0x368   : > { %879 = sbr.rel (%p2015_p4) target bundleno = 883 (0x373), region = 84 }
 0x369   : > { %v1286_v13 = vpop.eup %1285 }
 0x36a   : > { %v856_v15 = vmul.f32 %v1286_v13, %v841_v63  ;;  %v857_v16 = vmul.f32 %v1286_v13, %v842_v0 }
 0x36c   : > { %v865_v18 = vmul.f32 %v1112_v14, %v856_v15  ;;  %v866_v19 = vmul.f32 %v1112_v14, %v857_v16 }
 0x36e   : > { %v874_v20 = vadd.f32 %v1113_v17, %v865_v18  ;;  %v875_v21 = vadd.f32 %v1113_v17, %v866_v19 }
 0x370   : > { %v880_v22 = vmax.f32 %v874_v20, 0.0  ;;  %v881_v23 = vmax.f32 %v875_v21, 0.0 }
 0x372   : > { %882 = vst [vmem:[#allocation2] sm:$0xff] %v880_v22  ;;  %883 = vst [vmem:[#allocation2 + $0x8] sm:$0xff] %v881_v23 }
 0x373 PF: > { %p1115_p6 = scmp.ne.s32.totalorder %s1635_s25, 1 }
 0x374   : > { %888 = vst [vmem:[#allocation2] sm:$0xff] (!%p1115_p6), %v874_v20  ;;  %889 = vst [vmem:[#allocation2 + $0x8] sm:$0xff] (!%p1115_p6), %v875_v21 }
 0x375   : > { %887 = sbr.rel (%p1115_p6) target bundleno = 892 (0x37c), region = 88 }
 0x37c PF: > { %v890_v24 = vld [vmem:[#allocation2] sm:$0xff]  ;;  %s2016_s23 = sld [smem:[#allocation20_spill]]  ;;  %v891_v25 = vld [vmem:[#allocation2 + $0x8] sm:$0xff]  ;;  %s1124_s20 = sshll.u32 %s1635_s25, 8 }
 0x37d   : > { %892 = vst [vmem:[%s1825_s28] sm:$0xff] %v890_v24  ;;  %893 = vst [vmem:[%s1825_s28 + $0x8] sm:$0xff] %v891_v25  ;;  %s2017_s12 = sld [smem:[#allocation24_spill]]  ;;  %s908_s2 = sshll.u32 %s1825_s28, 4  ;;  %s1911_s2 = int_to_ptr.vmem [resolvable:$true] %s908_s2 }
 0x37e   : > { %s895_s15 = scalar_lea.sflag [#allocation5], %s1786_s18  ;;  %s1405_s21 = scalar_lea.vmem %s1911_s2, 256 }
 0x37f   : > { %p1406_p3 = scmp.ne.s32.totalorder %s1911_s2, %s1405_s21  ;;  %s1492_s25 = smov [#allocation11]  }
 0x380   : > { %s1409_s27 = sshll.u32 %s1492_s25, 4  ;;  %s1410_s27 = int_to_ptr.vmem [resolvable:$false] %s1409_s27 }
 0x381   : > { %s1411_s19 = scalar_lea.vmem %s1410_s27, 512  ;;  %p1412_p12 = scmp.lt.s32.totalorder %s1911_s2, %s1410_s27 }
 0x382   : > { %p2018_p1 = scmp.ne.s32.totalorder %s2016_s23, 0  ;;  %p1413_p13 = scmp.lt.s32.totalorder %s1411_s19, %s1405_s21 }
 0x383   : > { %s1908_s22 = scalar_lea.hbm %s2017_s12, %s1124_s20 }
 0x384   : > { %p1407_p5 = pnand %p1406_p3, %p2018_p1  ;;  %p1414_p8 = por %p1413_p13, %p1412_p12 }
 0x386   : > { %p1408_p7 = pneg %p1407_p5 }
 0x388   : > { %p1415_p11 = pnand %p1414_p8, %p1408_p7 }
 0x38a   : > { %1418 = shalt.err (!%p1415_p11)
}
 0x38b   : > { %s1419_s28 = scalar_lea.hbm %s1908_s22, 256  ;;  %s1423_s11 = scalar_lea.hbm %s2017_s12, 512 }
 0x38c   : > { %p1420_p0 = scmp.ne.s32.totalorder %s1908_s22, %s1419_s28  ;;  %p1424_p9 = scmp.lt.u32.totalorder %s1908_s22, %s2017_s12 }
 0x38d   : > { %p1425_p4 = scmp.lt.u32.totalorder %s1423_s11, %s1419_s28  ;;  %p1427_p3 = scmp.lt.u32.totalorder %s1419_s28, %s1908_s22 }
 0x38e   : > { %p1421_p10 = pnand %p1420_p0, %p2018_p1 }
 0x38f   : > { %p1426_p6 = por %p1425_p4, %p1424_p9 }
 0x390   : > { %p1422_p2 = pneg %p1421_p10 }
 0x391   : > { %p1428_p5 = por %p1427_p3, %p1426_p6 }
 0x393   : > { %p1429_p7 = pnand %p1428_p5, %p1422_p2 }
 0x395   : > { %1432 = shalt.err (!%p1429_p7)
}
 0x396   : > { %s1493_s26 = smov 128   ;;  %s1494_s20 = smov 8  }
 0x397   : > { %1201 = dma.vmem_to_hbm [thread:$0]  (%p2018_p1), %s1911_s2, 256, %s1908_s22, %s895_s15, %s1493_s26, %s1493_s26, %s1494_s20  }
 0x398 PF: > { %s2019_s13 = sld [smem:[#allocation16_spill]]  ;;  %s2020_s17 = sld [smem:[#allocation21_spill]] }
 0x399   : > { %p2022_p13 = scmp.ge.s32.totalorder %s1479_s16, 2 }
 0x39e   : > { %s923_s21 = sand.u32 1, %s2019_s13   ;;  %p2021_p12 = scmp.ne.s32.totalorder %s2020_s17, 0 }
 0x39f   : > { %s924_s25 = scalar_lea.sflag [#allocation5], %s923_s21 }
 0x3a0   : > { %p1218_p8 = pnand %p2022_p13, %p2021_p12 }
 0x3a2   : > { %1462 = dma.done.wait (!%p1218_p8), %s924_s25, 256  }
 0x3a3   : > { %1464 = vsyncadd (!%p1218_p8), %s924_s25, 4294967040  ;;  %s2023_s16 = sld [smem:[#allocation18_spill]]  ;;  %s2024_s27 = sld [smem:[#allocation17_spill]] }
 0x3a4   : > { %s2025_s15 = sld [smem:[#allocation19_spill]]  ;;  %s2026_s13 = smov %s1471_s14 }
 0x3a9   : > { %p27_p11 = scmp.ge.s32.totalorder %s2023_s16, 4   ;;  %s2027_s14 = smov %s2024_s27 }
 0x3ab   :  { %29 = sbr.rel (!%p27_p11) target bundleno = 12 (0xc), region = 158 }
 0x3b2   :  { %929 = vsyncpa [#allocation4], 1 }
 0x3b3   :  { %931 = vsyncpa [#allocation4 + $0x1], 1 }
 0x3b4   :  { %932 = vsyncpa [#allocation7], 1 }
 0x3b5   :  { %934 = vsyncpa [#allocation7 + $0x1], 1 }
 0x3b6   :  { %935 = vsyncpa [#allocation10], 1 }
 0x3b7   :  { %937 = vsyncpa [#allocation10 + $0x1], 1 }
 0x3b8   :  { %938 = vsyncpa [#allocation5], 1 }
 0x3b9   :  { %940 = vsyncpa [#allocation5 + $0x1], 1 }

</bundles_post_ra>
